<compile_context>
chip_gen: v5e
topology: v5e:2x2
jax: 0.10.0
libtpu: 0.0.40
codegen_flags: <defaults>
</compile_context>

<pallas_src>
import jax
import jax.numpy as jnp
from jax.experimental import pallas as pl
from jax.experimental.pallas import tpu as pltpu


def _round_up(x, m):
    return ((x + m - 1) // m) * m


# ----------------------------------------------------------------------------
# Fused Pallas kernel
# ----------------------------------------------------------------------------
def _make_fused_kernel(ops, n_conv):
    """Threads one (C, tile_p) real tile and one (C, tile_p) imaginary tile
    through a static list of fused ops, entirely in VMEM.

    Ref order: (xr, xi, A1, B1, ..., An, Bn, yr, yi) where
      A_k = [[Wr^T, -Wi^T], [Wi^T, Wr^T]]  (2*C_out, 2*C_in)
      B_k = [br^T; bi^T]                   (2*C_out, 1)
    """
    def kernel(xr_ref, xi_ref, *rest):
        weight_refs = rest[:2 * n_conv]
        yr_ref, yi_ref = rest[-2], rest[-1]

        hr = xr_ref[0].astype(jnp.float32)      # (C_in, tile_p)
        hi = xi_ref[0].astype(jnp.float32)      # (C_in, tile_p)
        h = None                                # stacked [real; imag] state
        conv_idx = 0
        for op in ops:
            if op == "conv":
                a = weight_refs[2 * conv_idx][...]       # (2*C_out, 2*C_in)
                b = weight_refs[2 * conv_idx + 1][...]   # (2*C_out, 1)
                if h is None:
                    # First conv while real/imag are still separate: two
                    # half-dots, avoiding any sublane concat of xr/xi.
                    c_in = hr.shape[0]
                    h = (jnp.dot(a[:, :c_in], hr,
                                 preferred_element_type=jnp.float32)
                         + jnp.dot(a[:, c_in:], hi,
                                   preferred_element_type=jnp.float32)
                         + b)
                else:
                    h = jnp.dot(a, h, preferred_element_type=jnp.float32) + b
                conv_idx += 1
            elif op == "relu":
                if h is None:
                    hr = jnp.maximum(hr, 0.0)
                    hi = jnp.maximum(hi, 0.0)
                else:
                    # Split ReLU == plain elementwise ReLU in stacked layout.
                    h = jnp.maximum(h, 0.0)
            else:  # pragma: no cover - only known ops are ever fused
                raise ValueError(f"unknown fused op: {op}")

        if h is None:
            yr, yi = hr, hi
        else:
            c_out = h.shape[0] // 2
            yr, yi = h[:c_out], h[c_out:]
        yr_ref[0] = yr.astype(yr_ref.dtype)
        yi_ref[0] = yi.astype(yi_ref.dtype)

    return kernel


def _pick_tile_p(p, c_in, c_out, *, bytes_per_elem=4,
                 vmem_budget_bytes=12 * 1024 * 1024, max_tile_p=32768):
    """Largest lane-dense (multiple-of-128) pixel tile whose double-buffered
    in+out tiles fit a conservative VMEM budget.  12 MiB stays under the
    16 MiB v5e scoped default (32 MiB on v6e/v7x) with headroom for weights
    and compiler scratch."""
    per_lane = 2 * (2 * c_in + 2 * c_out) * bytes_per_elem   # 2x double-buffer
    cap = max(vmem_budget_bytes // per_lane, 128)
    cap = (cap // 128) * 128
    return int(min(_round_up(p, 128), cap, max_tile_p))


def _run_fused_stack(xr, xi, ops, conv_params, *, out_dtype=None):
    """xr, xi: (N, C, H, W).  conv_params: list of (wr, wi, br, bi) with
    wr/wi: (C_in, C_out) and br/bi: (1, C_out).  Returns (yr, yi) as NCHW."""
    n, c_in0, h, w = xr.shape
    p = h * w
    out_dtype = out_dtype or xr.dtype

    # Free (contiguous) reshape NCHW -> (N, C, P).  No concat: real and
    # imaginary parts are two separate kernel inputs.
    xr2 = xr.reshape(n, c_in0, p)
    xi2 = xi.reshape(n, c_in0, p)

    # Block-structured real weights / biases built once, outside the kernel:
    #   A = [[Wr^T, -Wi^T], [Wi^T, Wr^T]]   (2*C_out, 2*C_in)
    #   B = [br^T; bi^T]                    (2*C_out, 1)
    big_weights = []
    c_out_last = c_in0
    for (wr, wi, br, bi) in conv_params:
        a = jnp.concatenate(
            [jnp.concatenate([wr.T, -wi.T], axis=1),
             jnp.concatenate([wi.T, wr.T], axis=1)], axis=0)
        b = jnp.concatenate(
            [jnp.reshape(br, (-1, 1)), jnp.reshape(bi, (-1, 1))], axis=0)
        big_weights += [a.astype(jnp.float32), b.astype(jnp.float32)]
        c_out_last = wr.shape[1]

    tile_p = _pick_tile_p(p, c_in0, c_out_last)
    p_pad = _round_up(p, tile_p)
    if p_pad != p:
        # Only hit when H*W is not a multiple of 128; padded lanes are junk
        # and are sliced off after the kernel.
        xr2 = jnp.pad(xr2, ((0, 0), (0, 0), (0, p_pad - p)))
        xi2 = jnp.pad(xi2, ((0, 0), (0, 0), (0, p_pad - p)))

    grid = (n, p_pad // tile_p)             # N >= 2 => both v7x TCs get work

    in_spec = pl.BlockSpec((1, c_in0, tile_p), lambda i, j: (i, 0, j))
    out_spec = pl.BlockSpec((1, c_out_last, tile_p), lambda i, j: (i, 0, j))
    w_specs = [pl.BlockSpec(wgt.shape, lambda i, j: (0, 0))
               for wgt in big_weights]

    n_conv = len(conv_params)
    kernel = _make_fused_kernel(tuple(ops), n_conv)

    yr, yi = pl.pallas_call(
        kernel,
        out_shape=(jax.ShapeDtypeStruct((n, c_out_last, p_pad), out_dtype),
                   jax.ShapeDtypeStruct((n, c_out_last, p_pad), out_dtype)),
        grid_spec=pltpu.PrefetchScalarGridSpec(
            num_scalar_prefetch=0,
            grid=grid,
            in_specs=[in_spec, in_spec] + w_specs,
            out_specs=[out_spec, out_spec],
        ),
        compiler_params=pltpu.CompilerParams(
            dimension_semantics=("parallel", "parallel")),
    )(xr2, xi2, *big_weights)

    if p_pad != p:
        yr = yr[:, :, :p]
        yi = yi[:, :, :p]
    return (yr.reshape(n, c_out_last, h, w),
            yi.reshape(n, c_out_last, h, w))


# ----------------------------------------------------------------------------
# Modules (each takes (input1, input2) and returns (input1, input2))
# ----------------------------------------------------------------------------
class ComplexPointwiseConv:
    """Complex-valued 1x1 convolution (channel mixing)."""
    fused_op = "conv"

    def __init__(self, wr, wi, br, bi):
        self.wr, self.wi, self.br, self.bi = wr, wi, br, bi

    def fused_params(self):
        return (self.wr, self.wi, self.br, self.bi)

    def __call__(self, x1, x2):
        # Standalone (unfused) path: a single-layer fused stack.
        return _run_fused_stack(x1, x2, ["conv"], [self.fused_params()])


class ComplexReLU:
    """Split ReLU applied independently to real and imaginary parts."""
    fused_op = "relu"

    def fused_params(self):
        return None

    def __call__(self, x1, x2):
        return jnp.maximum(x1, 0.0), jnp.maximum(x2, 0.0)


class SequentialComplex:
    """Pallas equivalent of PyTorch Sequential_complex: threads
    (input1, input2) through each sub-module in order.  When every sub-module
    is fusible (ComplexPointwiseConv / ComplexReLU) the entire stack runs as
    ONE Pallas kernel: one launch, one HBM round trip."""

    def __init__(self, *modules):
        self._modules = list(modules)

    def __len__(self):
        return len(self._modules)

    def __getitem__(self, idx):
        return self._modules[idx]

    def __call__(self, input1, input2):
        if self._modules and all(hasattr(m, "fused_op") for m in self._modules):
            ops = [m.fused_op for m in self._modules]
            conv_params = [m.fused_params() for m in self._modules
                           if m.fused_op == "conv"]
            return _run_fused_stack(input1, input2, ops, conv_params)
        # Fallback: original (unfused) container semantics.
        for module in self._modules:
            input1, input2 = module(input1, input2)
        return (input1, input2)


# ----------------------------------------------------------------------------
# Pure-JAX reference for correctness checking
# ----------------------------------------------------------------------------
def _ref_forward(xr, xi, params):
    for (wr, wi, br, bi) in params:
        n, c, h, w = xr.shape
        xr_rows = jnp.transpose(xr, (0, 2, 3, 1)).reshape(n * h * w, c)
        xi_rows = jnp.transpose(xi, (0, 2, 3, 1)).reshape(n * h * w, c)
        yr = xr_rows @ wr - xi_rows @ wi + br
        yi = xr_rows @ wi + xi_rows @ wr + bi
        c_out = wr.shape[1]
        xr = jnp.transpose(yr.reshape(n, h, w, c_out), (0, 3, 1, 2))
        xi = jnp.transpose(yi.reshape(n, h, w, c_out), (0, 3, 1, 2))
        xr = jnp.maximum(xr, 0.0)
        xi = jnp.maximum(xi, 0.0)
    return xr, xi


if __name__ == "__main__":
    key = jax.random.PRNGKey(0)
    kx1, kx2, kw1, kw2, kw3, kw4 = jax.random.split(key, 6)

    N, C, H, W = 2, 4, 16, 16          # input shapes: [2, 4, 16, 16]
    x_real = jax.random.normal(kx1, (N, C, H, W), dtype=jnp.float32)
    x_imag = jax.random.normal(kx2, (N, C, H, W), dtype=jnp.float32)

    # deterministic parameter init (two complex 1x1-conv layers, C -> C)
    wr1 = 0.1 * jax.random.normal(kw1, (C, C), dtype=jnp.float32)
    wi1 = 0.1 * jax.random.normal(kw2, (C, C), dtype=jnp.float32)
    br1 = jnp.full((1, C), 0.05, dtype=jnp.float32)
    bi1 = jnp.full((1, C), -0.05, dtype=jnp.float32)

    wr2 = 0.1 * jax.random.normal(kw3, (C, C), dtype=jnp.float32)
    wi2 = 0.1 * jax.random.normal(kw4, (C, C), dtype=jnp.float32)
    br2 = jnp.full((1, C), 0.02, dtype=jnp.float32)
    bi2 = jnp.full((1, C), 0.03, dtype=jnp.float32)

    model = SequentialComplex(
        ComplexPointwiseConv(wr1, wi1, br1, bi1),
        ComplexReLU(),
        ComplexPointwiseConv(wr2, wi2, br2, bi2),
        ComplexReLU(),
    )

    out1, out2 = model(x_real, x_imag)
    out1 = jax.block_until_ready(out1)
    out2 = jax.block_until_ready(out2)

    # correctness check against pure-JAX reference
    ref1, ref2 = _ref_forward(x_real, x_imag,
                              [(wr1, wi1, br1, bi1), (wr2, wi2, br2, bi2)])
    assert out1.shape == (N, C, H, W) and out2.shape == (N, C, H, W)
    assert jnp.allclose(out1, ref1, atol=1e-5, rtol=1e-5)
    assert jnp.allclose(out2, ref2, atol=1e-5, rtol=1e-5)

    print("KERNEL_OK")
</pallas_src>

<mosaic_0001>
module attributes {stable_mosaic.version = 11 : i64} {
  func.func @kernel(%arg0: i32, %arg1: i32, %arg2: memref<1x4x256xf32, #tpu.memory_space<vmem>>, %arg3: memref<1x4x256xf32, #tpu.memory_space<vmem>>, %arg4: memref<8x8xf32, #tpu.memory_space<vmem>>, %arg5: memref<8x1xf32, #tpu.memory_space<vmem>>, %arg6: memref<8x8xf32, #tpu.memory_space<vmem>>, %arg7: memref<8x1xf32, #tpu.memory_space<vmem>>, %arg8: memref<1x4x256xf32, #tpu.memory_space<vmem>>, %arg9: memref<1x4x256xf32, #tpu.memory_space<vmem>>) attributes {dimension_semantics = [#tpu.dimension_semantics<parallel>, #tpu.dimension_semantics<parallel>], iteration_bounds = array<i64: 2, 1>, scalar_prefetch = 0 : i64, scratch_operands = 0 : i64, tpu.core_type = #tpu.core_type<tc>, window_params = [{transform_indices = @transform_0, window_bounds = array<i64: 1, 4, 256>}, {transform_indices = @transform_1, window_bounds = array<i64: 1, 4, 256>}, {pipeline_mode = #tpu.pipeline_mode<synchronous>, transform_indices = @transform_2, window_bounds = array<i64: 8, 8>}, {pipeline_mode = #tpu.pipeline_mode<synchronous>, transform_indices = @transform_3, window_bounds = array<i64: 8, 1>}, {pipeline_mode = #tpu.pipeline_mode<synchronous>, transform_indices = @transform_4, window_bounds = array<i64: 8, 8>}, {pipeline_mode = #tpu.pipeline_mode<synchronous>, transform_indices = @transform_5, window_bounds = array<i64: 8, 1>}, {transform_indices = @transform_6, window_bounds = array<i64: 1, 4, 256>}, {transform_indices = @transform_7, window_bounds = array<i64: 1, 4, 256>}]} {
    %c0 = arith.constant 0 : index
    %c0_0 = arith.constant 0 : index
    %c0_1 = arith.constant 0 : index
    %0 = vector.load %arg2[%c0, %c0_0, %c0_1] : memref<1x4x256xf32, #tpu.memory_space<vmem>>, vector<1x4x256xf32>
    %1 = vector.shape_cast %0 : vector<1x4x256xf32> to vector<4x256xf32>
    %c0_2 = arith.constant 0 : index
    %c0_3 = arith.constant 0 : index
    %c0_4 = arith.constant 0 : index
    %2 = vector.load %arg3[%c0_2, %c0_3, %c0_4] : memref<1x4x256xf32, #tpu.memory_space<vmem>>, vector<1x4x256xf32>
    %3 = vector.shape_cast %2 : vector<1x4x256xf32> to vector<4x256xf32>
    %c0_5 = arith.constant 0 : index
    %c0_6 = arith.constant 0 : index
    %4 = vector.load %arg4[%c0_5, %c0_6] : memref<8x8xf32, #tpu.memory_space<vmem>>, vector<8x8xf32>
    %c0_7 = arith.constant 0 : index
    %c0_8 = arith.constant 0 : index
    %5 = vector.load %arg5[%c0_7, %c0_8] : memref<8x1xf32, #tpu.memory_space<vmem>>, vector<8x1xf32>
    %6 = vector.extract_strided_slice %4 {offsets = [0, 0], sizes = [8, 4], strides = [1, 1]} : vector<8x8xf32> to vector<8x4xf32>
    %cst = arith.constant dense<0.000000e+00> : vector<8x256xf32>
    %7 = tpu.matmul %6, %1, %cst {dimension_numbers = #tpu.dot_dimension_numbers<[1], [0], [0], [1], [0, 0, 1, 1], [], []>} : vector<8x4xf32>, vector<4x256xf32>, vector<8x256xf32> -> vector<8x256xf32>
    %8 = vector.extract_strided_slice %4 {offsets = [0, 4], sizes = [8, 4], strides = [1, 1]} : vector<8x8xf32> to vector<8x4xf32>
    %cst_9 = arith.constant dense<0.000000e+00> : vector<8x256xf32>
    %9 = tpu.matmul %8, %3, %cst_9 {dimension_numbers = #tpu.dot_dimension_numbers<[1], [0], [0], [1], [0, 0, 1, 1], [], []>} : vector<8x4xf32>, vector<4x256xf32>, vector<8x256xf32> -> vector<8x256xf32>
    %10 = arith.addf %7, %9 : vector<8x256xf32>
    %11 = vector.broadcast %5 : vector<8x1xf32> to vector<8x256xf32>
    %12 = arith.addf %10, %11 : vector<8x256xf32>
    %cst_10 = arith.constant 0.000000e+00 : f32
    %13 = vector.broadcast %cst_10 : f32 to vector<8x256xf32>
    %14 = arith.maximumf %12, %13 : vector<8x256xf32>
    %c0_11 = arith.constant 0 : index
    %c0_12 = arith.constant 0 : index
    %15 = vector.load %arg6[%c0_11, %c0_12] : memref<8x8xf32, #tpu.memory_space<vmem>>, vector<8x8xf32>
    %c0_13 = arith.constant 0 : index
    %c0_14 = arith.constant 0 : index
    %16 = vector.load %arg7[%c0_13, %c0_14] : memref<8x1xf32, #tpu.memory_space<vmem>>, vector<8x1xf32>
    %cst_15 = arith.constant dense<0.000000e+00> : vector<8x256xf32>
    %17 = tpu.matmul %15, %14, %cst_15 {dimension_numbers = #tpu.dot_dimension_numbers<[1], [0], [0], [1], [0, 0, 1, 1], [], []>} : vector<8x8xf32>, vector<8x256xf32>, vector<8x256xf32> -> vector<8x256xf32>
    %18 = vector.broadcast %16 : vector<8x1xf32> to vector<8x256xf32>
    %19 = arith.addf %17, %18 : vector<8x256xf32>
    %cst_16 = arith.constant 0.000000e+00 : f32
    %20 = vector.broadcast %cst_16 : f32 to vector<8x256xf32>
    %21 = arith.maximumf %19, %20 : vector<8x256xf32>
    %22 = vector.extract_strided_slice %21 {offsets = [0, 0], sizes = [4, 256], strides = [1, 1]} : vector<8x256xf32> to vector<4x256xf32>
    %23 = vector.extract_strided_slice %21 {offsets = [4, 0], sizes = [4, 256], strides = [1, 1]} : vector<8x256xf32> to vector<4x256xf32>
    %c0_17 = arith.constant 0 : index
    %c0_18 = arith.constant 0 : index
    %c0_19 = arith.constant 0 : index
    %24 = vector.load %arg8[%c0_17, %c0_18, %c0_19] : memref<1x4x256xf32, #tpu.memory_space<vmem>>, vector<1x4x256xf32>
    %25 = vector.shape_cast %24 : vector<1x4x256xf32> to vector<4x256xf32>
    %26 = vector.shape_cast %22 : vector<4x256xf32> to vector<1x4x256xf32>
    tpu.vector_store %arg8[%c0_17, %c0_18, %c0_19], %26 {strides = array<i32>} : memref<1x4x256xf32, #tpu.memory_space<vmem>>, vector<1x4x256xf32>,
    %c0_20 = arith.constant 0 : index
    %c0_21 = arith.constant 0 : index
    %c0_22 = arith.constant 0 : index
    %27 = vector.load %arg9[%c0_20, %c0_21, %c0_22] : memref<1x4x256xf32, #tpu.memory_space<vmem>>, vector<1x4x256xf32>
    %28 = vector.shape_cast %27 : vector<1x4x256xf32> to vector<4x256xf32>
    %29 = vector.shape_cast %23 : vector<4x256xf32> to vector<1x4x256xf32>
    tpu.vector_store %arg9[%c0_20, %c0_21, %c0_22], %29 {strides = array<i32>} : memref<1x4x256xf32, #tpu.memory_space<vmem>>, vector<1x4x256xf32>,
    return
  }
  func.func @transform_0(%arg0: i32, %arg1: i32) -> (i32, i32, i32) {
    %c0_i32 = arith.constant 0 : i32
    %c0_i32_0 = arith.constant 0 : i32
    return %arg0, %c0_i32, %arg1 : i32, i32, i32
  }
  func.func @transform_1(%arg0: i32, %arg1: i32) -> (i32, i32, i32) {
    %c0_i32 = arith.constant 0 : i32
    %c0_i32_0 = arith.constant 0 : i32
    return %arg0, %c0_i32, %arg1 : i32, i32, i32
  }
  func.func @transform_2(%arg0: i32, %arg1: i32) -> (i32, i32) {
    %c0_i32 = arith.constant 0 : i32
    %c0_i32_0 = arith.constant 0 : i32
    %c0_i32_1 = arith.constant 0 : i32
    return %c0_i32, %c0_i32_0 : i32, i32
  }
  func.func @transform_3(%arg0: i32, %arg1: i32) -> (i32, i32) {
    %c0_i32 = arith.constant 0 : i32
    %c0_i32_0 = arith.constant 0 : i32
    %c0_i32_1 = arith.constant 0 : i32
    return %c0_i32, %c0_i32_0 : i32, i32
  }
  func.func @transform_4(%arg0: i32, %arg1: i32) -> (i32, i32) {
    %c0_i32 = arith.constant 0 : i32
    %c0_i32_0 = arith.constant 0 : i32
    %c0_i32_1 = arith.constant 0 : i32
    return %c0_i32, %c0_i32_0 : i32, i32
  }
  func.func @transform_5(%arg0: i32, %arg1: i32) -> (i32, i32) {
    %c0_i32 = arith.constant 0 : i32
    %c0_i32_0 = arith.constant 0 : i32
    %c0_i32_1 = arith.constant 0 : i32
    return %c0_i32, %c0_i32_0 : i32, i32
  }
  func.func @transform_6(%arg0: i32, %arg1: i32) -> (i32, i32, i32) {
    %c0_i32 = arith.constant 0 : i32
    %c0_i32_0 = arith.constant 0 : i32
    return %arg0, %c0_i32, %arg1 : i32, i32, i32
  }
  func.func @transform_7(%arg0: i32, %arg1: i32) -> (i32, i32, i32) {
    %c0_i32 = arith.constant 0 : i32
    %c0_i32_0 = arith.constant 0 : i32
    return %arg0, %c0_i32, %arg1 : i32, i32, i32
  }
}

</mosaic_0001>

<bundles_post_ra>
// kernel: tpu_custom_call.1
= control target key start
LH: loop header
LB: loop body
LE: loop exit
PB: predicated region body
PF: predicated region fallthrough
CT: control target
= control target key end

     0   :  { %s1342_s0 = inlined_call_operand.vmem [shape: f32[2,4,256], index: 0, kind: input, shape index: {}]   ;;  %s1343_s1 = inlined_call_operand.hbm [shape: f32[2,4,256], index: 1, kind: input, shape index: {}]   ;;  %s1344_s2 = inlined_call_operand.hbm [shape: f32[8,8], index: 2, kind: input, shape index: {}]   ;;  %s1345_s3 = inlined_call_operand.vmem [shape: f32[8,1], index: 3, kind: input, shape index: {}]   ;;  %s1346_s4 = inlined_call_operand.hbm [shape: f32[8,8], index: 4, kind: input, shape index: {}]   ;;  %s1347_s5 = inlined_call_operand.vmem [shape: f32[8,1], index: 5, kind: input, shape index: {}]   ;;  %s1348_s6 = inlined_call_operand.hbm [shape: f32[2,4,256], index: 6, kind: output, shape index: {0}]   ;;  %s1349_s7 = inlined_call_operand.hbm [shape: f32[2,4,256], index: 7, kind: output, shape index: {1}]  }
   0x1   :  { %1350 = sst [smem:[#allocation15_spill]] %s1342_s0 }
   0x2   :  { %1351 = sst [smem:[#allocation16_spill]] %s1344_s2 }
   0x3   :  { %1352 = sst [smem:[#allocation17_spill]] %s1346_s4 }
   0x4   :  { %13 = vsyncpa [#allocation3], 0 }
   0x5   :  { %15 = vsyncpa [#allocation3 + $0x1], 0 }
   0x6   :  { %16 = vsyncpa [#allocation6], 0 }
   0x7   :  { %17 = vsyncpa [#allocation4], 0 }
   0x8   :  { %19 = vsyncpa [#allocation4 + $0x1], 0 }
   0x9   :  { %20 = vsyncpa [#allocation10], 0 }
   0xa   :  { %22 = vsyncpa [#allocation10 + $0x1], 0  ;;  %s1162_s24 = smov 0   ;;  %s1164_s25 = smov 0  }
   0xb   :  { %s1166_s26 = smov 0   ;;  %s1168_s27 = smov 0  }
   0xc   :  { %s1170_s28 = smov 0   ;;  %s1172_s29 = smov 0  }
   0xd LB: > { %s777_s30 = sadd.s32 4294967295, %s1116_s29   ;;  %s778_s8 = sadd.s32 4294967294, %s1116_s29   ;;  %s1116_s29 = sphi %s1172_s29, %s28_s29   ;;  %s1112_s28 = sphi %s1170_s28, %s1365_s28   ;;  %s1108_s27 = sphi %s1168_s27, %s1364_s27   ;;  %s1104_s26 = sphi %s1166_s26, %s1363_s26   ;;  %s1100_s25 = sphi %s1164_s25, %s1362_s25   ;;  %s1096_s24 = sphi %s1162_s24, %s1361_s24  }
   0xe   : > { %p90_p0 = scmp.ne.s32.totalorder %s1100_s25, %s1096_s24  ;;  %p1196_p1 = scmp.eq.s32.totalorder %s777_s30, 0 }
   0xf   : > { %p206_p2 = scmp.eq.s32.totalorder %s778_s8, 1  ;;  %p779_p4 = scmp.ge.s32.totalorder %s1116_s29, 1 }
  0x10   : > { %p1202_p3 = por %p1196_p1, %p90_p0  ;;  %p241_p6 = scmp.lt.s32.totalorder %s1116_s29, 3 }
  0x11   : > { %p1207_p5 = por %p206_p2, %p90_p0  ;;  %s1356_s2 = sld [smem:[#allocation16_spill]] }
  0x12   : > { %p1215_p7 = pnand %p779_p4, %p241_p6  ;;  %p782_p8 = scmp.ge.s32.totalorder %s1116_s29, 2 }
  0x13   : > { %s1118_s16 = smov [#allocation5]   ;;  %s1358_s4 = sld [smem:[#allocation17_spill]] }
  0x14   : > { %p830_p9 = pneg %p1215_p7  ;;  %s255_s17 = sshll.u32 %s1118_s16, 4  ;;  %s256_s17 = int_to_ptr.vmem [resolvable:$true] %s255_s17 }
  0x15   : > { %s1119_s21 = smov [#allocation7]   ;;  %p200_p11 = scmp.eq.s32.totalorder %s777_s30, 1 }
  0x16   : > { %p831_p10 = pnand %p830_p9, %p1196_p1  ;;  %s270_s22 = sshll.u32 %s1119_s21, 4  ;;  %s271_s22 = int_to_ptr.vmem [resolvable:$true] %s270_s22 }
  0x17   : > { %s253_s14 = sshll.u32 %s1356_s2, 4  ;;  %s40_s23 = sadd.s32 1, %s1112_s28  ;;  %s254_s14 = int_to_ptr.hbm [resolvable:$true] %s253_s14 }
  0x18   : > { %833 = dma.hbm_to_vmem [thread:$0]  (!%p831_p10), %s254_s14, 128, %s256_s17, [#allocation6]  }
  0x19   : > { %s268_s20 = sshll.u32 %s1358_s4, 4  ;;  %p42_p12 = scmp.ge.s32.totalorder %s40_s23, 2  ;;  %s269_s20 = int_to_ptr.hbm [resolvable:$true] %s268_s20 }
  0x1a   : > { %836 = dma.hbm_to_vmem [thread:$0]  (!%p831_p10), %s269_s20, 128, %s271_s22, [#allocation6]  }
  0x1b   : > { %s77_s8 = sadd.s32 1, %s1104_s26  ;;  %p84_p13 = scmp.ne.s32.totalorder %s1104_s26, %s1100_s25 }
  0x1c   : > { %p85_p0 = scmp.eq.s32.totalorder %s1116_s29, 0  ;;  %s1367_s23 = smov (%p42_p12, %s40_s23), 0 }
  0x1d   : > { %p1234_p2 = por %p200_p11, %p84_p13  ;;  %p850_p4 = scmp.lt.s32.totalorder %s1116_s29, 2 }
  0x1e   : > { %s72_s13 = ssub.s32 %s1112_s28, %s1367_s23  ;;  %s297_s14 = sand.u32 1, %s1104_s26  }
  0x1f   : > { %p75_p6 = scmp.eq.s32.totalorder %s72_s13, 0  ;;  %p86_p9 = por %p85_p0, %p84_p13 }
  0x20   : > { %s783_s16 = sshll.u32 %s297_s14, 3  ;;  %s812_s30 = sshll.u32 %s1112_s28, 3 }
  0x21   : > { %s1244_s17 = scalar_select %p75_p6, %s1104_s26, %s77_s8  }
  0x22   : > { %s308_s20 = scalar_lea.hbm %s1343_s1, %s812_s30  ;;  %s301_s22 = scalar_lea.vmem [#allocation2], %s783_s16 }
  0x23   : > { %s310_s21 = sshll.u32 %s308_s20, 4  ;;  %s312_s2 = sshll.u32 %s301_s22, 4  ;;  %s311_s21 = int_to_ptr.hbm [resolvable:$true] %s310_s21  ;;  %s313_s2 = int_to_ptr.vmem [resolvable:$true] %s312_s2 }
  0x24   : > { %p838_p10 = pnand %p850_p4, %p86_p9  ;;  %s298_s4 = scalar_lea.sflag [#allocation3], %s297_s14 }
  0x25   : > { %321 = sbr.rel (%p1215_p7) target bundleno = 442 (0x1ba), region = 44  ;;  %s1254_s8 = sand.u32 (!%p1215_p7), 1, %s1100_s25  }
  0x26   : > { %840 = dma.hbm_to_vmem [thread:$0]  (!%p838_p10), %s311_s21, 128, %s313_s2, %s298_s4  }
  0x27   : > { %s1257_s13 = sshll.u32 (!%p1215_p7), %s1254_s8, 3  ;;  %s324_s16 = scalar_lea.sflag (!%p1215_p7), [#allocation3], %s1254_s8 }
  0x28   : > { %s327_s30 = scalar_lea.vmem (!%p1215_p7), [#allocation2], %s1257_s13 }
  0x2a   : > { %1079 = dma.done.wait (%p1202_p3), %s324_s16, 128  }
  0x2b   : > { %1081 = vsyncadd (%p1202_p3), %s324_s16, 4294967168 }
  0x2c   : > { %1083 = dma.done.wait (%p1196_p1), [#allocation6], 256  }
  0x2d   : > { %1085 = vsyncadd (%p1196_p1), [#allocation6], 4294967040  ;;  %p384_p7 = scmp.lt.s32.totalorder %s1108_s27, 1  ;;  %v398_v0 = vld [vmem:[#allocation5] sm:$0xff]  ;;  %v397_v1 = vld [vmem:[%s327_s30] sm:$0xff]  ;;  %s1120_s15 = smov 124  }
  0x2e   : > { %401 = vrot.lane.b32.xlu0 %v398_v0, %s1120_s15  ;;  %404 = vst [vmem:[#allocation1] ss:$2 sm:$0xff] %v397_v1  ;;  %s1360_s0 = sld [smem:[#allocation15_spill]]  ;;  %vm410_vm0 = vcmask 1043456   ;;  %vm407_vm1 = vcmask 31744   ;;  %v399_v7 = vld [vmem:[%s1345_s3] sm:$0xff] }
  0x2f   : > { %s385_s2 = scalar_select %p384_p7, %s1108_s27, 1  ;;  %v1121_v8 = vmov 0   ;;  %v515_v10 = vld [vmem:[%s1347_s5] sm:$0xff]  ;;  %vm521_vm2 = vcmask 64512  }
  0x30   : > { %906 = vset.pattern.permute.xlu0 %v1121_v8  ;;  %907 = vset.pattern.permute.xlu1 %v1121_v8  ;;  %v514_v22 = vld [vmem:[#allocation7] sm:$0xff]  ;;  %s814_s22 = sshll.u32 %s1108_s27, 3  ;;  %s382_s9 = scalar_lea.vmem [#allocation9], %s1257_s13 }
  0x31   : > { %s813_s4 = sshll.u32 %s385_s2, 3  ;;  %518 = vperm.xlu1 %907, %v515_v10   ;;  %s598_s2 = scalar_lea.hbm %s1348_s6, %s814_s22 }
  0x32   : > { %s602_s14 = sshll.u32 %s598_s2, 4  ;;  %s1294_s19 = sshll.u32 %s382_s9, 4  ;;  %s603_s14 = int_to_ptr.hbm [resolvable:$true] %s602_s14  ;;  %s618_s19 = int_to_ptr.vmem [resolvable:$true] %s1294_s19 }
  0x33   : > { %s580_s21 = scalar_lea.sflag [#allocation4], %s1254_s8  ;;  %s1012_s16 = sshra.s32 %s603_s14, 4  ;;  %s1013_s16 = int_to_ptr.hbm [resolvable:$true] %s1012_s16 }
  0x34   : > { %s391_s10 = scalar_lea.vmem %s1360_s0, %s813_s4  ;;  %s375_s4 = scalar_lea.vmem [#allocation8], %s1257_s13 }
  0x35   : > { %v396_v2 = vld [vmem:[%s391_s10] sm:$0xff]  ;;  %v406_v4 = vld.sshfl [vmem:[#allocation1 + $0x8] sm:$0xff pattern:$0x75316420]  ;;  %s600_s15 = sshll.u32 %s375_s4, 4  ;;  %s615_s10 = scalar_lea.hbm %s1349_s7, %s814_s22  ;;  %s601_s15 = int_to_ptr.vmem [resolvable:$true] %s600_s15 }
  0x36   : > { %v405_v3 = vld.sshfl [vmem:[#allocation1] sm:$0xff pattern:$0x75316420]  ;;  %796 = vmatpush.msk.msra.mxu1 %vm410_vm0, %v406_v4  ;;  %507 = vperm.xlu0 %906, %v399_v7   ;;  %s619_s20 = sshll.u32 %s615_s10, 4  ;;  %s1014_s30 = scalar_lea.hbm %s1013_s16, 8  ;;  %s620_s20 = int_to_ptr.hbm [resolvable:$true] %s619_s20 }
  0x37   : > { %456 = vst [vmem:[#allocation1] ss:$2 sm:$0xff] %v396_v2  ;;  %794 = vmatpush.msk.msra.mxu0 %vm410_vm0, %v405_v3  ;;  %p1015_p1 = scmp.ne.s32.totalorder %s1013_s16, %s1014_s30  ;;  %s1018_s27 = scalar_lea.hbm %s1348_s6, 16 }
  0x38   : > { %p1019_p12 = scmp.lt.s32.totalorder %s1013_s16, %s1348_s6  ;;  %p1020_p13 = scmp.lt.s32.totalorder %s1018_s27, %s1014_s30 }
  0x39   : > { %p1016_p3 = pnand %p1015_p1, %p1234_p2 }
  0x3a   : > { %p1021_p0 = por %p1020_p13, %p1019_p12 }
  0x3b   : > { %p1017_p11 = pneg %p1016_p3 }
  0x3d   : > { %p1022_p4 = pnand %p1021_p0, %p1017_p11 }
  0x3e   : > { %v457_v5 = vld.sshfl [vmem:[#allocation1] sm:$0xff pattern:$0x75316420]  ;;  %v458_v6 = vld.sshfl [vmem:[#allocation1 + $0x8] sm:$0xff pattern:$0x75316420] }
  0x3f   : > { %798 = vmatpush.msk.msra.mxu2 %vm410_vm0, %v457_v5  ;;  %800 = vmatpush.msk.msra.mxu3 %vm410_vm0, %v458_v6 }
  0x40   : > { %799 = vmatmul.msk.f32.vlgmr.msra.gmra.mxu2 %vm407_vm1, %v398_v0  ;;  %801 = vmatmul.msk.f32.vlgmr.msra.gmra.mxu3 %vm407_vm1, %v398_v0 }
  0xa0   : > { %v402_v9 = vpop.permute.xlu0 %401 }
  0xa1   : > { %795 = vmatmul.msk.f32.vlgmr.msra.gmra.mxu0 %vm407_vm1, %v402_v9  ;;  %797 = vmatmul.msk.f32.vlgmr.msra.gmra.mxu1 %vm407_vm1, %v402_v9 }
  0xa3   : > { %v519_v23 = vpop.permute.xlu1 %518 }
  0xa8   : > { %v508_v13 = vpop.permute.xlu0 %507 }
  0xc3   : > { %v482_v11 = vpop.f32.mrf.mxu2  ;;  %v502_v12 = vpop.f32.mrf.mxu3 }
 0x11e   : > { %v432_v14 = vpop.f32.mrf.mxu0  ;;  %v452_v15 = vpop.f32.mrf.mxu1 }
 0x11f   : > { %v483_v16 = vadd.f32 %v482_v11, %v432_v14  ;;  %v503_v17 = vadd.f32 %v502_v12, %v452_v15 }
 0x121   : > { %v510_v18 = vadd.f32 %v508_v13, %v483_v16  ;;  %v511_v19 = vadd.f32 %v508_v13, %v503_v17 }
 0x123   : > { %v512_v20 = vmax.f32 %v510_v18, 0.0  ;;  %v513_v21 = vmax.f32 %v511_v19, 0.0 }
 0x125   : > { %540 = vmatpush.msrb.mxu0 %v512_v20  ;;  %560 = vmatpush.msrb.mxu1 %v513_v21 }
 0x126   : > { %803 = vmatmul.msk.f32.vlgmr.msrb.gmra.mxu1 %vm521_vm2, %v514_v22  ;;  %802 = vmatmul.msk.f32.vlgmr.msrb.gmra.mxu0 %vm521_vm2, %v514_v22 }
 0x1a3   : > { %v562_v24 = vpop.f32.mrf.mxu1  ;;  %v542_v25 = vpop.f32.mrf.mxu0 }
 0x1a4   : > { %v563_v26 = vadd.f32 %v562_v24, %v519_v23  ;;  %v543_v27 = vadd.f32 %v542_v25, %v519_v23 }
 0x1a6   : > { %v566_v28 = vmax.f32 %v563_v26, 0.0  ;;  %v565_v29 = vmax.f32 %v543_v27, 0.0 }
 0x1a8   : > { %v569_v30 = vrot.slane %v566_v28, 4  ;;  %574 = vst.sshfl [vmem:[#allocation1 + $0x8] sm:$0xff pattern:$0x75316420] %v566_v28 }
 0x1a9   : > { %573 = vst.sshfl [vmem:[#allocation1] sm:$0xff pattern:$0x75316420] %v565_v29 }
 0x1aa   : > { %v570_v31 = vsel %vm410_vm0, %v565_v29, %v569_v30 }
 0x1ab   : > { %572 = vst [vmem:[%s375_s4] sm:$0xff] %v570_v31 }
 0x1ac   : > { %1025 = shalt.err (!%p1022_p4)
}
 0x1ad   : > { %826 = dma.vmem_to_hbm [thread:$0]  (%p1234_p2), %s601_s15, 128, %s603_s14, %s580_s21  }
 0x1ae   : > { %s585_s13 = scalar_lea.sflag [#allocation10], %s1254_s8  ;;  %s1040_s4 = sshra.s32 %s620_s20, 4  ;;  %s1041_s4 = int_to_ptr.hbm [resolvable:$true] %s1040_s4 }
 0x1af   : > { %s1042_s10 = scalar_lea.hbm %s1041_s4, 8  ;;  %s1046_s30 = scalar_lea.hbm %s1349_s7, 16 }
 0x1b0   : > { %v576_v32 = vld [vmem:[#allocation1 + $0x1] ss:$2 sm:$0xff]  ;;  %p1043_p6 = scmp.ne.s32.totalorder %s1041_s4, %s1042_s10  ;;  %p1047_p7 = scmp.lt.s32.totalorder %s1041_s4, %s1349_s7 }
 0x1b1   : > { %578 = vst [vmem:[%s382_s9] sm:$0xff] %v576_v32  ;;  %p1048_p1 = scmp.lt.s32.totalorder %s1046_s30, %s1042_s10 }
 0x1b2   : > { %p1044_p9 = pnand %p1043_p6, %p1234_p2 }
 0x1b3   : > { %p1049_p3 = por %p1048_p1, %p1047_p7 }
 0x1b4   : > { %p1045_p10 = pneg %p1044_p9 }
 0x1b6   : > { %p1050_p11 = pnand %p1049_p3, %p1045_p10 }
 0x1b8   : > { %1053 = shalt.err (!%p1050_p11)
}
 0x1b9   : > { %827 = dma.vmem_to_hbm [thread:$0]  (%p1234_p2), %s618_s19, 128, %s620_s20, %s585_s13  }
 0x1ba PF: > { %s631_s8 = sand.u32 1, %s1096_s24   ;;  %p842_p12 = pnand %p782_p8, %p1207_p5 }
 0x1bb   : > { %s632_s15 = scalar_lea.sflag [#allocation4], %s631_s8 }
 0x1bc   : > { %p843_p13 = pneg %p842_p12 }
 0x1be   : > { %1087 = dma.done.wait (%p843_p13), %s632_s15, 128  }
 0x1bf   : > { %1089 = vsyncadd (%p843_p13), %s632_s15, 4294967168  ;;  %s642_s14 = scalar_lea.sflag [#allocation10], %s631_s8 }
 0x1c0   : > { %1091 = dma.done.wait (%p843_p13), %s642_s14, 128  }
 0x1c1   : > { %1093 = vsyncadd (%p843_p13), %s642_s14, 4294967168  ;;  %s28_s29 = sadd.s32 1, %s1116_s29   ;;  %s1361_s24 = smov %s1100_s25 }
 0x1c2   : > { %p25_p0 = scmp.ge.s32.totalorder %s28_s29, 4   ;;  %s1362_s25 = smov %s1104_s26 }
 0x1c3   : > { %s1363_s26 = smov %s1244_s17  ;;  %s1364_s27 = smov %s1112_s28 }
 0x1c4   : > { %s1365_s28 = smov %s1367_s23  ;;  %27 = sbr.rel (!%p25_p0) target bundleno = 13 (0xd), region = 118 }
 0x1c9   :  { %648 = vsyncpa [#allocation3], 1 }
 0x1ca   :  { %650 = vsyncpa [#allocation3 + $0x1], 1 }
 0x1cb   :  { %651 = vsyncpa [#allocation6], 1 }
 0x1cc   :  { %652 = vsyncpa [#allocation4], 1 }
 0x1cd   :  { %654 = vsyncpa [#allocation4 + $0x1], 1 }
 0x1ce   :  { %655 = vsyncpa [#allocation10], 1 }
 0x1cf   :  { %657 = vsyncpa [#allocation10 + $0x1], 1 }

</bundles_post_ra>
